<compile_context>
chip_gen: v6e
topology: v6e:2x2x1
jax: 0.10.0
libtpu: 0.0.40
codegen_flags: <defaults>
</compile_context>

<pallas_src>
import functools

import jax
import jax.numpy as jnp
from jax import lax
from jax.experimental import pallas as pl
from jax.experimental.pallas import tpu as pltpu

_NEG_INF = -1e30  # finite "minus infinity" avoids inf-inf edge cases


def _flash_encoder_kernel(q_ref, kv_ref, o_ref, m_ref, l_ref, qb_ref, *,
                          bf16_exp):
    # q_ref:  (1, tq, Dp) f32  block of x (queries + residual source)
    # kv_ref: (1, tk, Dp) bf16 block of x (keys == values, self-attention)
    # o_ref:  (1, tq, Dp) f32  resident output block, doubles as the accumulator
    kv_i = pl.program_id(2)

    @pl.when(kv_i == 0)
    def _init():
        m_ref[...] = jnp.full(m_ref.shape, _NEG_INF, dtype=m_ref.dtype)
        l_ref[...] = jnp.zeros(l_ref.shape, dtype=l_ref.dtype)
        o_ref[...] = jnp.zeros(o_ref.shape, dtype=o_ref.dtype)
        # Cache the bf16 q tile once; the q block stays resident across the kv
        # axis, so this cast would otherwise be repeated every kv step.
        qb_ref[...] = q_ref[0].astype(jnp.bfloat16)

    q = qb_ref[...]          # (tq, Dp) bf16, cached
    kv = kv_ref[0]           # (tk, Dp) bf16, streamed as bf16 from HBM

    # scores = q @ kv^T with the transpose folded into the operand feed.
    s = lax.dot_general(
        q, kv,
        dimension_numbers=(((1,), (1,)), ((), ())),
        preferred_element_type=jnp.float32)                      # (tq, tk) f32

    m_prev = m_ref[...]                                          # (tq, 1)
    m_new = jnp.maximum(m_prev, jnp.max(s, axis=-1, keepdims=True))
    alpha = jnp.exp(m_prev - m_new)                              # (tq, 1) f32

    if bf16_exp:
        # v6e/v7x: bf16 EUP ~2x exp throughput; row-sum accumulates in f32.
        p = jnp.exp((s - m_new).astype(jnp.bfloat16))            # (tq, tk) bf16
        row_sum = jnp.sum(p, axis=-1, keepdims=True, dtype=jnp.float32)
        pv = jnp.dot(p, kv, preferred_element_type=jnp.float32)
    else:
        # v5e / older: no bf16 EUP/VPU -> keep all softmax math f32.
        p = jnp.exp(s - m_new)                                   # (tq, tk) f32
        row_sum = jnp.sum(p, axis=-1, keepdims=True)
        pv = jnp.dot(p.astype(jnp.bfloat16), kv,
                     preferred_element_type=jnp.float32)

    l_ref[...] = alpha * l_ref[...] + row_sum
    o_ref[0] = alpha * o_ref[0] + pv                             # f32 accumulate
    m_ref[...] = m_new

    @pl.when(kv_i == pl.num_programs(2) - 1)
    def _finalize():
        inv_l = pl.reciprocal(l_ref[...], approx=True)           # EUP, ~free
        # residual add (dropout p=0.0 is identity); normalize in place.
        o_ref[0] = o_ref[0] * inv_l + q_ref[0]


def _largest_divisor(L, target, aligns):
    """Largest divisor of L <= target that is a multiple of one of `aligns`
    (tried in priority order). Returns L itself if L <= target, else None if
    no such divisor exists."""
    if L <= target:
        return L
    for align in aligns:
        t = (target // align) * align
        while t >= align:
            if L % t == 0:
                return t
            t -= align
    return None


def _device_config():
    kind = jax.devices()[0].device_kind.lower()
    if "v7" in kind:
        # 64 MiB physical VMEM per TC -> leave headroom for compiler scratch.
        return dict(vmem_limit=48 * 1024 * 1024, mxu_align=256,
                    bf16_exp=True, two_cores=True)
    if "v6" in kind:
        return dict(vmem_limit=96 * 1024 * 1024, mxu_align=256,
                    bf16_exp=True, two_cores=False)
    if "v5" in kind:
        # No bf16 VPU/EUP on v5e; MXU is 4x128x128 -> 128 alignment.
        return dict(vmem_limit=96 * 1024 * 1024, mxu_align=128,
                    bf16_exp=False, two_cores=False)
    return dict(vmem_limit=64 * 1024 * 1024, mxu_align=128,
                bf16_exp=False, two_cores=False)


def encoder_layer(x, *, tq=None, tk=None):
    """x: [B, L, D] float32 -> softmax(x @ x^T) @ x + x, [B, L, D] float32."""
    B, L, D = x.shape
    cfg = _device_config()
    mxu_align = cfg["mxu_align"]
    aligns = (mxu_align, 128, 8) if mxu_align != 128 else (128, 8)

    # Lane-densify: pad D to a multiple of 128 so the PV matmul N-dim and the
    # output stores are unmasked. Zero padding leaves QK^T scores, the PV
    # product, and the residual unchanged in the first D columns.
    # TODO(synk): for small D a head/batch fold into the lane dim would avoid
    # the padded HBM traffic, but needs a per-batch block-diagonal layout.
    Dp = -(-D // 128) * 128
    xp = jnp.pad(x, ((0, 0), (0, 0), (0, Dp - D))) if Dp != D else x
    # kv is re-streamed L/tq times per batch -> pre-cast it to bf16 once so
    # both the HBM bytes and the per-step in-kernel casts are halved.
    kv = xp.astype(jnp.bfloat16)

    if tk is None:
        tk = _largest_divisor(L, 256, aligns) or L
    if tq is None:
        # VMEM budget (~60% of the limit) for resident blocks + scratch:
        #   q(f32,2buf) + out(f32,2buf) + bf16 q scratch ~= 18*tq*Dp bytes
        #   kv(bf16,2buf)                                ~=  4*tk*Dp bytes
        #   (tq,tk) f32 intermediates (s, p, ...)        ~= 16*tq*tk bytes
        budget = int(0.6 * cfg["vmem_limit"])
        tq_max = max(8, (budget - 4 * tk * Dp) // (18 * Dp + 16 * tk))
        tq = _largest_divisor(L, tq_max, aligns) or L
        # v7x megacore: make sure both TensorCores get parallel work.
        if cfg["two_cores"] and B * (L // tq) < 2:
            smaller = _largest_divisor(L, max(8, L // 2), aligns)
            if smaller is not None and L > smaller:
                tq = smaller
    assert L % tq == 0 and L % tk == 0, "tile sizes must divide L"
    # TODO(synk): non-divisible L would need a masked tail tile; the fallback
    # above uses a single full-L tile instead.

    grid = (B, L // tq, L // tk)  # kv (reduction) axis last
    kernel = functools.partial(_flash_encoder_kernel, bf16_exp=cfg["bf16_exp"])

    flops = 4 * B * L * L * Dp                     # QK^T + PV MACs * 2
    transcendentals = B * L * L                    # one exp per score element
    bytes_accessed = (B * L * Dp * 4               # q, read once per q-tile
                      + (L // tq) * B * L * Dp * 2 # kv re-streamed in bf16
                      + B * L * Dp * 4)            # output write

    out = pl.pallas_call(
        kernel,
        out_shape=jax.ShapeDtypeStruct((B, L, Dp), x.dtype),
        grid_spec=pltpu.PrefetchScalarGridSpec(
            num_scalar_prefetch=0,
            grid=grid,
            in_specs=[
                pl.BlockSpec((1, tq, Dp), lambda b, qi, ki: (b, qi, 0)),  # q (f32)
                pl.BlockSpec((1, tk, Dp), lambda b, qi, ki: (b, ki, 0)),  # kv (bf16)
                # TODO(synk): on v5e add pipeline_mode=pl.Buffered(3) to the kv
                # spec if the xprof trace shows exposed DMA time.
            ],
            # Output block index ignores the kv axis -> stays resident and is
            # used directly as the f32 accumulator (finalized on the last step).
            out_specs=pl.BlockSpec((1, tq, Dp), lambda b, qi, ki: (b, qi, 0)),
            scratch_shapes=[
                pltpu.VMEM((tq, 1), jnp.float32),      # running max m
                pltpu.VMEM((tq, 1), jnp.float32),      # running denom l
                pltpu.VMEM((tq, Dp), jnp.bfloat16),    # cached bf16 q tile
            ],
        ),
        compiler_params=pltpu.CompilerParams(
            dimension_semantics=("parallel", "parallel", "arbitrary"),
            vmem_limit_bytes=cfg["vmem_limit"],
        ),
        cost_estimate=pl.CostEstimate(
            flops=flops,
            transcendentals=transcendentals,
            bytes_accessed=bytes_accessed),
    )(xp, kv)
    return out[..., :D] if Dp != D else out


def encoder_layer_ref(x):
    # Pure-JAX f32 reference matching the PyTorch module semantics.
    scores = jnp.einsum("bld,bmd->blm", x, x)
    p = jax.nn.softmax(scores, axis=-1)
    att = jnp.einsum("blm,bmd->bld", p, x)
    return att + x


if __name__ == "__main__":
    key = jax.random.PRNGKey(0)

    # Small shape consistent with the module: B=2, seq L=8, model_dim D=32.
    B, L, D = 2, 8, 32
    x = jax.random.normal(key, (B, L, D), dtype=jnp.float32)
    out = jax.block_until_ready(encoder_layer(x))
    ref = encoder_layer_ref(x)
    assert out.shape == (B, L, D)
    # bf16 MXU/EUP operands (f32 accumulation) + approx reciprocal -> relaxed tol.
    assert jnp.allclose(out, ref, atol=5e-2, rtol=5e-2), "mismatch (single tile)"

    # Multi-q-tile / multi-kv-tile online-softmax path with forced small tiles.
    B2, L2, D2 = 2, 16, 32
    x2 = jax.random.normal(jax.random.PRNGKey(1), (B2, L2, D2), dtype=jnp.float32)
    out2 = jax.block_until_ready(encoder_layer(x2, tq=8, tk=8))
    ref2 = encoder_layer_ref(x2)
    assert out2.shape == (B2, L2, D2)
    assert jnp.allclose(out2, ref2, atol=5e-2, rtol=5e-2), "mismatch (tiled)"

    # Lane-dense (no padding) path: D already a multiple of 128.
    B3, L3, D3 = 2, 16, 128
    x3 = jax.random.normal(jax.random.PRNGKey(2), (B3, L3, D3), dtype=jnp.float32)
    out3 = jax.block_until_ready(encoder_layer(x3, tq=8, tk=8))
    ref3 = encoder_layer_ref(x3)
    assert out3.shape == (B3, L3, D3)
    assert jnp.allclose(out3, ref3, atol=1e-1, rtol=5e-2), "mismatch (no-pad)"

    print("KERNEL_OK")
</pallas_src>

<mosaic_0001>
module attributes {stable_mosaic.version = 11 : i64} {
  func.func @_flash_encoder_kernel(%arg0: i32, %arg1: i32, %arg2: i32, %arg3: memref<1x8x128xf32, #tpu.memory_space<vmem>>, %arg4: memref<1x8x128xbf16, #tpu.memory_space<vmem>>, %arg5: memref<1x8x128xf32, #tpu.memory_space<vmem>>, %arg6: memref<8x1xf32, #tpu.memory_space<vmem>>, %arg7: memref<8x1xf32, #tpu.memory_space<vmem>>, %arg8: memref<8x128xbf16, #tpu.memory_space<vmem>>) attributes {dimension_semantics = [#tpu.dimension_semantics<parallel>, #tpu.dimension_semantics<parallel>, #tpu.dimension_semantics<arbitrary>], iteration_bounds = array<i64: 2, 1, 1>, scalar_prefetch = 0 : i64, scratch_operands = 3 : i64, tpu.core_type = #tpu.core_type<tc>, window_params = [{transform_indices = @transform_0, window_bounds = array<i64: 1, 8, 128>}, {transform_indices = @transform_1, window_bounds = array<i64: 1, 8, 128>}, {transform_indices = @transform_2, window_bounds = array<i64: 1, 8, 128>}]} {
    %c0_i32 = arith.constant 0 : i32
    %0 = arith.cmpi eq, %arg2, %c0_i32 : i32
    %1 = arith.extui %0 : i1 to i32
    %c0_i32_0 = arith.constant 0 : i32
    %2 = arith.cmpi ne, %1, %c0_i32_0 : i32
    scf.if %2 {
      %cst_24 = arith.constant -1.000000e+30 : f32
      %36 = vector.broadcast %cst_24 : f32 to vector<8x1xf32>
      %c0_25 = arith.constant 0 : index
      %c0_26 = arith.constant 0 : index
      %37 = vector.load %arg6[%c0_25, %c0_26] : memref<8x1xf32, #tpu.memory_space<vmem>>, vector<8x1xf32>
      tpu.vector_store %arg6[%c0_25, %c0_26], %36 {strides = array<i32>} : memref<8x1xf32, #tpu.memory_space<vmem>>, vector<8x1xf32>,
      %cst_27 = arith.constant 0.000000e+00 : f32
      %38 = vector.broadcast %cst_27 : f32 to vector<8x1xf32>
      %c0_28 = arith.constant 0 : index
      %c0_29 = arith.constant 0 : index
      %39 = vector.load %arg7[%c0_28, %c0_29] : memref<8x1xf32, #tpu.memory_space<vmem>>, vector<8x1xf32>
      tpu.vector_store %arg7[%c0_28, %c0_29], %38 {strides = array<i32>} : memref<8x1xf32, #tpu.memory_space<vmem>>, vector<8x1xf32>,
      %cst_30 = arith.constant 0.000000e+00 : f32
      %40 = vector.broadcast %cst_30 : f32 to vector<1x8x128xf32>
      %c0_31 = arith.constant 0 : index
      %c0_32 = arith.constant 0 : index
      %c0_33 = arith.constant 0 : index
      %41 = vector.load %arg5[%c0_31, %c0_32, %c0_33] : memref<1x8x128xf32, #tpu.memory_space<vmem>>, vector<1x8x128xf32>
      tpu.vector_store %arg5[%c0_31, %c0_32, %c0_33], %40 {strides = array<i32>} : memref<1x8x128xf32, #tpu.memory_space<vmem>>, vector<1x8x128xf32>,
      %c0_34 = arith.constant 0 : index
      %c0_35 = arith.constant 0 : index
      %c0_36 = arith.constant 0 : index
      %42 = vector.load %arg3[%c0_34, %c0_35, %c0_36] : memref<1x8x128xf32, #tpu.memory_space<vmem>>, vector<1x8x128xf32>
      %43 = vector.shape_cast %42 : vector<1x8x128xf32> to vector<8x128xf32>
      %44 = arith.truncf %43 : vector<8x128xf32> to vector<8x128xbf16>
      %c0_37 = arith.constant 0 : index
      %c0_38 = arith.constant 0 : index
      %45 = vector.load %arg8[%c0_37, %c0_38] : memref<8x128xbf16, #tpu.memory_space<vmem>>, vector<8x128xbf16>
      tpu.vector_store %arg8[%c0_37, %c0_38], %44 {strides = array<i32>} : memref<8x128xbf16, #tpu.memory_space<vmem>>, vector<8x128xbf16>,
    } else {
    }
    %c0 = arith.constant 0 : index
    %c0_1 = arith.constant 0 : index
    %3 = vector.load %arg8[%c0, %c0_1] : memref<8x128xbf16, #tpu.memory_space<vmem>>, vector<8x128xbf16>
    %c0_2 = arith.constant 0 : index
    %c0_3 = arith.constant 0 : index
    %c0_4 = arith.constant 0 : index
    %4 = vector.load %arg4[%c0_2, %c0_3, %c0_4] : memref<1x8x128xbf16, #tpu.memory_space<vmem>>, vector<1x8x128xbf16>
    %5 = vector.shape_cast %4 : vector<1x8x128xbf16> to vector<8x128xbf16>
    %cst = arith.constant dense<0.000000e+00> : vector<8x8xf32>
    %6 = tpu.matmul %3, %5, %cst {dimension_numbers = #tpu.dot_dimension_numbers<[1], [1], [0], [0], [0, 0, 1, 0], [], []>} : vector<8x128xbf16>, vector<8x128xbf16>, vector<8x8xf32> -> vector<8x8xf32>
    %c0_5 = arith.constant 0 : index
    %c0_6 = arith.constant 0 : index
    %7 = vector.load %arg6[%c0_5, %c0_6] : memref<8x1xf32, #tpu.memory_space<vmem>>, vector<8x1xf32>
    %cst_7 = arith.constant dense<0xFF800000> : vector<8xf32>
    %8 = vector.multi_reduction <maximumf>, %6, %cst_7 [1] : vector<8x8xf32> to vector<8xf32>
    %9 = vector.shape_cast %8 : vector<8xf32> to vector<8x1xf32>
    %10 = arith.maximumf %7, %9 : vector<8x1xf32>
    %11 = arith.subf %7, %10 : vector<8x1xf32>
    %12 = math.exp %11 : vector<8x1xf32>
    %13 = vector.broadcast %10 : vector<8x1xf32> to vector<8x8xf32>
    %14 = arith.subf %6, %13 : vector<8x8xf32>
    %15 = math.exp %14 : vector<8x8xf32>
    %cst_8 = arith.constant dense<0.000000e+00> : vector<8xf32>
    %16 = vector.multi_reduction <add>, %15, %cst_8 [1] : vector<8x8xf32> to vector<8xf32>
    %17 = vector.shape_cast %16 : vector<8xf32> to vector<8x1xf32>
    %18 = arith.truncf %15 : vector<8x8xf32> to vector<8x8xbf16>
    %cst_9 = arith.constant dense<0.000000e+00> : vector<8x128xf32>
    %19 = tpu.matmul %18, %5, %cst_9 {dimension_numbers = #tpu.dot_dimension_numbers<[1], [0], [0], [1], [0, 0, 1, 1], [], []>} : vector<8x8xbf16>, vector<8x128xbf16>, vector<8x128xf32> -> vector<8x128xf32>
    %c0_10 = arith.constant 0 : index
    %c0_11 = arith.constant 0 : index
    %20 = vector.load %arg7[%c0_10, %c0_11] : memref<8x1xf32, #tpu.memory_space<vmem>>, vector<8x1xf32>
    %21 = arith.mulf %12, %20 : vector<8x1xf32>
    %22 = arith.addf %21, %17 : vector<8x1xf32>
    %c0_12 = arith.constant 0 : index
    %c0_13 = arith.constant 0 : index
    %23 = vector.load %arg7[%c0_12, %c0_13] : memref<8x1xf32, #tpu.memory_space<vmem>>, vector<8x1xf32>
    tpu.vector_store %arg7[%c0_12, %c0_13], %22 {strides = array<i32>} : memref<8x1xf32, #tpu.memory_space<vmem>>, vector<8x1xf32>,
    %c0_14 = arith.constant 0 : index
    %c0_15 = arith.constant 0 : index
    %c0_16 = arith.constant 0 : index
    %24 = vector.load %arg5[%c0_14, %c0_15, %c0_16] : memref<1x8x128xf32, #tpu.memory_space<vmem>>, vector<1x8x128xf32>
    %25 = vector.shape_cast %24 : vector<1x8x128xf32> to vector<8x128xf32>
    %26 = vector.broadcast %12 : vector<8x1xf32> to vector<8x128xf32>
    %27 = arith.mulf %26, %25 : vector<8x128xf32>
    %28 = arith.addf %27, %19 : vector<8x128xf32>
    %c0_17 = arith.constant 0 : index
    %c0_18 = arith.constant 0 : index
    %c0_19 = arith.constant 0 : index
    %29 = vector.load %arg5[%c0_17, %c0_18, %c0_19] : memref<1x8x128xf32, #tpu.memory_space<vmem>>, vector<1x8x128xf32>
    %30 = vector.shape_cast %29 : vector<1x8x128xf32> to vector<8x128xf32>
    %31 = vector.shape_cast %28 : vector<8x128xf32> to vector<1x8x128xf32>
    tpu.vector_store %arg5[%c0_17, %c0_18, %c0_19], %31 {strides = array<i32>} : memref<1x8x128xf32, #tpu.memory_space<vmem>>, vector<1x8x128xf32>,
    %c0_20 = arith.constant 0 : index
    %c0_21 = arith.constant 0 : index
    %32 = vector.load %arg6[%c0_20, %c0_21] : memref<8x1xf32, #tpu.memory_space<vmem>>, vector<8x1xf32>
    tpu.vector_store %arg6[%c0_20, %c0_21], %10 {strides = array<i32>} : memref<8x1xf32, #tpu.memory_space<vmem>>, vector<8x1xf32>,
    %c0_i32_22 = arith.constant 0 : i32
    %33 = arith.cmpi eq, %arg2, %c0_i32_22 : i32
    %34 = arith.extui %33 : i1 to i32
    %c0_i32_23 = arith.constant 0 : i32
    %35 = arith.cmpi ne, %34, %c0_i32_23 : i32
    scf.if %35 {
      %c0_24 = arith.constant 0 : index
      %c0_25 = arith.constant 0 : index
      %36 = vector.load %arg7[%c0_24, %c0_25] : memref<8x1xf32, #tpu.memory_space<vmem>>, vector<8x1xf32>
      %37 = tpu.reciprocal %36 {approx = true} : vector<8x1xf32> -> vector<8x1xf32>
      %c0_26 = arith.constant 0 : index
      %c0_27 = arith.constant 0 : index
      %c0_28 = arith.constant 0 : index
      %38 = vector.load %arg5[%c0_26, %c0_27, %c0_28] : memref<1x8x128xf32, #tpu.memory_space<vmem>>, vector<1x8x128xf32>
      %39 = vector.shape_cast %38 : vector<1x8x128xf32> to vector<8x128xf32>
      %40 = vector.broadcast %37 : vector<8x1xf32> to vector<8x128xf32>
      %41 = arith.mulf %39, %40 : vector<8x128xf32>
      %c0_29 = arith.constant 0 : index
      %c0_30 = arith.constant 0 : index
      %c0_31 = arith.constant 0 : index
      %42 = vector.load %arg3[%c0_29, %c0_30, %c0_31] : memref<1x8x128xf32, #tpu.memory_space<vmem>>, vector<1x8x128xf32>
      %43 = vector.shape_cast %42 : vector<1x8x128xf32> to vector<8x128xf32>
      %44 = arith.addf %41, %43 : vector<8x128xf32>
      %c0_32 = arith.constant 0 : index
      %c0_33 = arith.constant 0 : index
      %c0_34 = arith.constant 0 : index
      %45 = vector.load %arg5[%c0_32, %c0_33, %c0_34] : memref<1x8x128xf32, #tpu.memory_space<vmem>>, vector<1x8x128xf32>
      %46 = vector.shape_cast %45 : vector<1x8x128xf32> to vector<8x128xf32>
      %47 = vector.shape_cast %44 : vector<8x128xf32> to vector<1x8x128xf32>
      tpu.vector_store %arg5[%c0_32, %c0_33, %c0_34], %47 {strides = array<i32>} : memref<1x8x128xf32, #tpu.memory_space<vmem>>, vector<1x8x128xf32>,
    } else {
    }
    return
  }
  func.func @transform_0(%arg0: i32, %arg1: i32, %arg2: i32) -> (i32, i32, i32) {
    %c0_i32 = arith.constant 0 : i32
    %c0_i32_0 = arith.constant 0 : i32
    return %arg0, %arg1, %c0_i32 : i32, i32, i32
  }
  func.func @transform_1(%arg0: i32, %arg1: i32, %arg2: i32) -> (i32, i32, i32) {
    %c0_i32 = arith.constant 0 : i32
    %c0_i32_0 = arith.constant 0 : i32
    return %arg0, %arg2, %c0_i32 : i32, i32, i32
  }
  func.func @transform_2(%arg0: i32, %arg1: i32, %arg2: i32) -> (i32, i32, i32) {
    %c0_i32 = arith.constant 0 : i32
    %c0_i32_0 = arith.constant 0 : i32
    return %arg0, %arg1, %c0_i32 : i32, i32, i32
  }
}

</mosaic_0001>

<bundles_post_ra>
// kernel: tpu_custom_call.1
= control target key start
LH: loop header
LB: loop body
LE: loop exit
PB: predicated region body
PF: predicated region fallthrough
CT: control target
= control target key end

     0   :  { %7 = vsyncpa [#allocation6], 0  ;;  %s953_s0 = inlined_call_operand.hbm [shape: f32[2,8,128], index: 0, kind: input, shape index: {}]   ;;  %s954_s1 = inlined_call_operand.hbm [shape: bf16[2,8,128], index: 1, kind: input, shape index: {}]   ;;  %s955_s2 = inlined_call_operand.hbm [shape: f32[2,8,128], index: 2, kind: output, shape index: {}]  }
   0x1   :  { %9 = vsyncpa [#allocation6 + $0x1], 0 }
   0x2   :  { %10 = vsyncpa [#allocation9], 0 }
   0x3   :  { %12 = vsyncpa [#allocation9 + $0x1], 0 }
   0x4   :  { %13 = vsyncpa [#allocation7], 0 }
   0x5   :  { %15 = vsyncpa [#allocation7 + $0x1], 0  ;;  %s773_s9 = smov 0   ;;  %s775_s10 = smov 0  }
   0x6   :  { %s777_s11 = smov 0   ;;  %s779_s12 = smov 0  }
   0x7   :  { %s781_s13 = smov 0   ;;  %s783_s14 = smov 0  }
   0x8 LB: > { %s497_s15 = sadd.s32 4294967295, %s749_s14   ;;  %s498_s16 = sadd.s32 4294967294, %s749_s14   ;;  %s749_s14 = sphi %s783_s14, %s21_s14   ;;  %s745_s13 = sphi %s781_s13, %s967_s13   ;;  %s741_s12 = sphi %s779_s12, %s966_s12   ;;  %s737_s11 = sphi %s777_s11, %s965_s11   ;;  %s733_s10 = sphi %s775_s10, %s964_s10   ;;  %s729_s9 = sphi %s773_s9, %s963_s9  }
   0x9   : > { %s40_s17 = sadd.s32 1, %s745_s13  ;;  %s49_s18 = sadd.s32 1, %s737_s11 }
   0xa   : > { %p42_p0 = scmp.ge.s32.totalorder %s40_s17, 2  ;;  %p56_p1 = scmp.ne.s32.totalorder %s737_s11, %s733_s10 }
   0xb   : > { %p57_p2 = scmp.eq.s32.totalorder %s749_s14, 0  ;;  %p62_p3 = scmp.ne.s32.totalorder %s733_s10, %s729_s9 }
   0xc   : > { %s969_s17 = smov (%p42_p0, %s40_s17), 0  ;;  %p63_p5 = scmp.eq.s32.totalorder %s497_s15, 0 }
   0xd   : > { %p814_p4 = por %p57_p2, %p56_p1  ;;  %s44_s20 = ssub.s32 %s745_s13, %s969_s17 }
   0xe   : > { %p116_p6 = scmp.eq.s32.totalorder %s497_s15, 1  ;;  %p47_p7 = scmp.eq.s32.totalorder %s44_s20, 0 }
   0xf   : > { %p820_p8 = por %p63_p5, %p62_p3  ;;  %p122_p10 = scmp.eq.s32.totalorder %s498_s16, 1 }
  0x10   : > { %p824_p9 = por %p116_p6, %p56_p1  ;;  %p547_p13 = scmp.lt.s32.totalorder %s749_s14, 2 }
  0x11   : > { %s829_s23 = scalar_select %p47_p7, %s737_s11, %s49_s18  }
  0x12   : > { %p831_p11 = por %p122_p10, %p62_p3  ;;  %s838_s25 = sand.u32 1, %s737_s11  }
  0x13   : > { %s501_s26 = sshll.u32 %s838_s25, 3  ;;  %s502_s27 = sshll.u32 %s745_s13, 7 }
  0x14   : > { %s152_s30 = scalar_lea.hbm %s953_s0, %s502_s27  ;;  %s146_s3 = scalar_lea.vmem [#allocation5], %s501_s26 }
  0x15   : > { %s154_s4 = sshll.u32 %s146_s3, 4  ;;  %p847_p0 = pnand %p547_p13, %p814_p4  ;;  %s155_s4 = int_to_ptr.vmem [resolvable:$true] %s154_s4 }
  0x16   : > { %p505_p1 = scmp.ge.s32.totalorder %s749_s14, 1  ;;  %p178_p2 = scmp.lt.s32.totalorder %s749_s14, 3 }
  0x17   : > { %s143_s6 = scalar_lea.sflag [#allocation6], %s838_s25  ;;  %p611_p3 = pneg %p847_p0 }
  0x18   : > { %s622_s7 = scalar_lea.vmem %s155_s4, 128  ;;  %s751_s8 = smov [#allocation5]  }
  0x19   : > { %p623_p5 = scmp.ne.s32.totalorder %s155_s4, %s622_s7  ;;  %s627_s15 = sshll.u32 %s751_s8, 4  ;;  %s628_s15 = int_to_ptr.vmem [resolvable:$false] %s627_s15 }
  0x1a   : > { %s629_s16 = scalar_lea.vmem %s628_s15, 256  ;;  %p630_p4 = scmp.lt.s32.totalorder %s155_s4, %s628_s15 }
  0x1b   : > { %p625_p6 = pnand %p623_p5, %p611_p3  ;;  %p631_p10 = scmp.lt.s32.totalorder %s629_s16, %s622_s7 }
  0x1d   : > { %p626_p7 = pneg %p625_p6  ;;  %p632_p13 = por %p631_p10, %p630_p4 }
  0x1f   : > { %p633_p12 = pnand %p632_p13, %p626_p7 }
  0x21   : > { %636 = shalt.err (!%p633_p12)
}
  0x22   : > { %539 = dma.hbm_to_vmem [thread:$0]  (!%p847_p0), %s152_s30, 128, %s155_s4, %s143_s6  }
  0x23   : > { %p865_p5 = pnand %p505_p1, %p178_p2  ;;  %s503_s19 = sshll.u32 %s838_s25, 2 }
  0x24   : > { %s504_s20 = sshll.u32 %s745_s13, 6  ;;  %s165_s29 = scalar_lea.vmem [#allocation8], %s503_s19 }
  0x25   : > { %s171_s28 = scalar_lea.hbm %s954_s1, %s504_s20  ;;  %s173_s3 = sshll.u32 %s165_s29, 4  ;;  %s174_s3 = int_to_ptr.vmem [resolvable:$true] %s173_s3 }
  0x26   : > { %s162_s7 = scalar_lea.sflag [#allocation9], %s838_s25  ;;  %s650_s8 = scalar_lea.vmem %s174_s3, 64 }
  0x27   : > { %p651_p12 = scmp.ne.s32.totalorder %s174_s3, %s650_s8  ;;  %s752_s30 = smov [#allocation8]  }
  0x28   : > { %s655_s4 = sshll.u32 %s752_s30, 4  ;;  %s656_s4 = int_to_ptr.vmem [resolvable:$false] %s655_s4 }
  0x29   : > { %p653_p6 = pnand %p651_p12, %p611_p3  ;;  %s657_s6 = scalar_lea.vmem %s656_s4, 128 }
  0x2a   : > { %p658_p1 = scmp.lt.s32.totalorder %s174_s3, %s656_s4  ;;  %p659_p2 = scmp.lt.s32.totalorder %s657_s6, %s650_s8 }
  0x2b   : > { %p654_p7 = pneg %p653_p6 }
  0x2c   : > { %p660_p4 = por %p659_p2, %p658_p1 }
  0x2e   : > { %p661_p10 = pnand %p660_p4, %p654_p7 }
  0x30   : > { %664 = shalt.err (!%p661_p10)
}
  0x31   : > { %542 = dma.hbm_to_vmem [thread:$0]  (!%p847_p0), %s171_s28, 64, %s174_s3, %s162_s7  }
  0x32   : > { %182 = sbr.rel (%p865_p5) target bundleno = 850 (0x352), region = 28  ;;  %s883_s25 = sand.u32 (!%p865_p5), 1, %s733_s10  }
  0x33   : > { %s506_s15 = sshll.u32 (!%p865_p5), %s883_s25, 3  ;;  %s185_s16 = scalar_lea.sflag (!%p865_p5), [#allocation6], %s883_s25 }
  0x34   : > { %s188_s19 = scalar_lea.vmem (!%p865_p5), [#allocation5], %s506_s15 }
  0x37   : > { %716 = dma.done.wait (%p820_p8), %s185_s16, 128  }
  0x38   : > { %718 = vsyncadd (%p820_p8), %s185_s16, 4294967168  ;;  %s507_s5 = sshll.u32 %s883_s25, 2  ;;  %s194_s18 = scalar_lea.sflag [#allocation9], %s883_s25 }
  0x39   : > { %s197_s20 = scalar_lea.vmem [#allocation8], %s507_s5 }
  0x3a   : > { %720 = dma.done.wait (%p820_p8), %s194_s18, 64  }
  0x3b   : > { %722 = vsyncadd (%p820_p8), %s194_s18, 4294967232  ;;  %v753_v0 = vmov 0.0   ;;  %vm754_vm0 = vmmov 0   ;;  %v236_v1 = vld [vmem:[%s197_s20] sm:$0xf]  ;;  %v899_v2 = vld [vmem:[%s188_s19] sm:$0xff] }
  0x3c   : > { %518 = vmatprep.subr.bf16.mxu0 %v753_v0  ;;  %520 = vmatprep.mubr.msk.bf16.mxu0 %vm754_vm0, %v753_v0  ;;  %v233_v3 = vpack.c.bf16 %v899_v2, %v899_v2  ;;  %vm228_vm1 = vcmask 7168   ;;  %v755_v5 = vmov -1e+30   ;;  %vm278_vm2 = vcmask 64512   ;;  %s511_s21 = sshll.u32 %s741_s12, 7  ;;  %s222_s26 = scalar_lea.vmem [#allocation10], %s506_s15 }
  0x3d   : > { %524 = vmatprep.subr.bf16.mxu1 %v753_v0  ;;  %526 = vmatprep.mubr.msk.bf16.mxu1 %vm754_vm0, %v753_v0  ;;  %229 = vst.msk [vmem:[#allocation2] sm:$0xff] %vm228_vm1, %v755_v5  ;;  %230 = vst.msk [vmem:[#allocation3] sm:$0xff] %vm228_vm1, %v753_v0  ;;  %v756_v11 = vmov 0   ;;  %vm301_vm3 = vcmask 1043456   ;;  %s390_s27 = sshll.u32 %s222_s26, 4  ;;  %s388_s3 = scalar_lea.hbm %s955_s2, %s511_s21  ;;  %s391_s27 = int_to_ptr.vmem [resolvable:$true] %s390_s27 }
  0x3e   : > { %519 = vmatpush3.bf16.xpose.msra.mxu0 %v236_v1  ;;  %234 = vst [vmem:[#allocation4] sm:$0xf] %v233_v3  ;;  %601 = vset.pattern.permute.xlu0 %v756_v11  ;;  %v303_v16 = vsel %vm301_vm3, %v236_v1, 0  ;;  %s376_s7 = scalar_lea.sflag [#allocation7], %s883_s25  ;;  %s665_s8 = scalar_lea.vmem %s391_s27, 128 }
  0x3f   : > { %602 = vset.pattern.permute.xlu1 %v756_v11  ;;  %525 = vmatpush3.bf16.msra.mxu1 %v303_v16  ;;  %p666_p8 = scmp.ne.s32.totalorder %s391_s27, %s665_s8  ;;  %s757_s30 = smov [#allocation10]  }
  0x40   : > { %s669_s12 = sshll.u32 %s757_s30, 4  ;;  %s670_s12 = int_to_ptr.vmem [resolvable:$false] %s669_s12 }
  0x41   : > { %p667_p0 = pnand %p666_p8, %p824_p9  ;;  %s671_s4 = scalar_lea.vmem %s670_s12, 256 }
  0x42   : > { %p672_p13 = scmp.lt.s32.totalorder %s391_s27, %s670_s12  ;;  %p673_p5 = scmp.lt.s32.totalorder %s671_s4, %s665_s8 }
  0x43   : > { %p668_p3 = pneg %p667_p0 }
  0x44   : > { %v277_v12 = vld [vmem:[#allocation2] sm:$0xff]  ;;  %v345_v25 = vld [vmem:[#allocation3] sm:$0xff]  ;;  %p674_p12 = por %p673_p5, %p672_p13 }
  0x45   : > { %v235_v4 = vld [vmem:[#allocation4] sm:$0xf] }
  0x46   : > { %521 = vmatmul.mubr.bf16.vlgmr.msra.gmra.mxu0 %v235_v4  ;;  %p675_p6 = pnand %p674_p12, %p668_p3 }
 0x106   : > { %v271_v6 = vpop.f32.mrf.mxu0 }
 0x107   : > { %v279_v7 = vsel %vm278_vm2, %v271_v6, -inf }
 0x108   : > { %280 = vmax.xlane.f32.xlu0 %v279_v7  ;;  %v522_v8 = vpop.f32.mrf.mxu0 }
 0x10a   : > { %v274_v9 = vpop.f32.mrf.mxu0 }
 0x10c   : > { %v523_v10 = vpop.f32.mrf.mxu0 }
 0x191   : > { %v281_v13 = vpop.xlane.xlu0 %280 }
 0x192   : > { %v282_v14 = vmax.f32 %v277_v12, %v281_v13 }
 0x194   : > { %v283_v15 = vsub.f32 %v277_v12, %v282_v14  ;;  %359 = vst.msk [vmem:[#allocation2] sm:$0xff] %vm228_vm1, %v282_v14  ;;  %288 = vperm.xlu0 %601, %v282_v14  }
 0x196   : > { %v284_v21 = vmul.f32 1.442695, %v283_v15 }
 0x20f   : > { %v289_v17 = vpop.permute.xlu0 %288 }
 0x210   : > { %v291_v18 = vsub.f32 %v271_v6, %v289_v17 }
 0x212   : > { %v292_v19 = vmul.f32 1.442695, %v291_v18 }
 0x214   : > { %603 = vpow2.f32 %v292_v19 }
 0x215   : > { %605 = vpow2.f32 %v284_v21 }
 0x221   : > { %v604_v20 = vpop.eup %603 }
 0x222   : > { %v294_v22 = vsel %vm278_vm2, %v604_v20, 0.0  ;;  %v297_v23 = vpack.c.bf16 %v604_v20, %v604_v20  ;;  %v606_v24 = vpop.eup %605 }
 0x223   : > { %295 = vadd.xlane.f32.xlu1 %v294_v22  ;;  %v346_v26 = vmul.f32 %v606_v24, %v345_v25 }
 0x224   : > { %527 = vmatmul.mubr.msk.bf16.vlgmr.msra.gmra.mxu1 %vm278_vm2, %v297_v23 }
 0x234   : > { %353 = vperm.xlu1 %602, %v606_v24  }
 0x2ac   : > { %v296_v27 = vpop.xlane.xlu1 %295 }
 0x2ad   : > { %v347_v28 = vadd.f32 %v346_v26, %v296_v27 }
 0x2af   : > { %349 = vst.msk [vmem:[#allocation3] sm:$0xff] %vm228_vm1, %v347_v28 }
 0x2b0   : > { %v354_v35 = vpop.permute.xlu1 %353 }
 0x2b1   : > { %v356_v36 = vmul.f32 0.0, %v354_v35 }
 0x2b6   : > { %v363_v29 = vld [vmem:[#allocation3] sm:$0xff] }
 0x2b7   : > { %607 = vrcp.f32 %v363_v29 }
 0x2c4   : > { %v608_v30 = vpop.eup %607 }
 0x2c5   : > { %368 = vperm.xlu1 %602, %v608_v30  }
 0x2e4   : > { %v339_v31 = vpop.f32.mrf.mxu1 }
 0x2e5   : > { %v357_v37 = vadd.f32 %v356_v36, %v339_v31 }
 0x2e6   : > { %v528_v32 = vpop.f32.mrf.mxu1 }
 0x2e8   : > { %v342_v33 = vpop.f32.mrf.mxu1 }
 0x2ea   : > { %v529_v34 = vpop.f32.mrf.mxu1 }
 0x340   : > { %v369_v38 = vpop.permute.xlu1 %368 }
 0x341   : > { %v371_v39 = vmul.f32 %v369_v38, %v357_v37 }
 0x343   : > { %v373_v40 = vadd.f32 %v371_v39, %v899_v2 }
 0x345   : > { %374 = vst [vmem:[%s222_s26] sm:$0xff] %v373_v40 }
 0x346   : > { %678 = shalt.err (!%p675_p6)
}
 0x347   : > { %s679_s6 = scalar_lea.hbm %s388_s3, 128  ;;  %s683_s16 = scalar_lea.hbm %s955_s2, 256 }
 0x348   : > { %p680_p7 = scmp.ne.s32.totalorder %s388_s3, %s679_s6  ;;  %p684_p4 = scmp.lt.s32.totalorder %s388_s3, %s955_s2 }
 0x349   : > { %p685_p10 = scmp.lt.s32.totalorder %s683_s16, %s679_s6 }
 0x34a   : > { %p681_p1 = pnand %p680_p7, %p824_p9 }
 0x34b   : > { %p686_p8 = por %p685_p10, %p684_p4 }
 0x34c   : > { %p682_p2 = pneg %p681_p1 }
 0x34e   : > { %p687_p0 = pnand %p686_p8, %p682_p2 }
 0x350   : > { %690 = shalt.err (!%p687_p0)
}
 0x351   : > { %534 = dma.vmem_to_hbm [thread:$0]  (%p824_p9), %s391_s27, 128, %s388_s3, %s376_s7  }
 0x352 PF: > { %s402_s18 = sand.u32 1, %s729_s9   ;;  %p962_p3 = scmp.ge.s32.totalorder %s749_s14, 2 }
 0x353   : > { %s403_s20 = scalar_lea.sflag [#allocation7], %s402_s18 }
 0x354   : > { %p544_p13 = pnand %p962_p3, %p831_p11 }
 0x356   : > { %p545_p5 = pneg %p544_p13 }
 0x358   : > { %724 = dma.done.wait (%p545_p5), %s403_s20, 128  }
 0x359   : > { %726 = vsyncadd (%p545_p5), %s403_s20, 4294967168  ;;  %s21_s14 = sadd.s32 1, %s749_s14   ;;  %s963_s9 = smov %s733_s10 }
 0x35a   : > { %p18_p12 = scmp.ge.s32.totalorder %s21_s14, 4   ;;  %s964_s10 = smov %s737_s11 }
 0x35b   : > { %s965_s11 = smov %s829_s23  ;;  %s966_s12 = smov %s745_s13 }
 0x35c   : > { %s967_s13 = smov %s969_s17  ;;  %20 = sbr.rel (!%p18_p12) target bundleno = 8 (0x8), region = 94 }
 0x361   :  { %408 = vsyncpa [#allocation6], 1 }
 0x362   :  { %410 = vsyncpa [#allocation6 + $0x1], 1 }
 0x363   :  { %411 = vsyncpa [#allocation9], 1 }
 0x364   :  { %413 = vsyncpa [#allocation9 + $0x1], 1 }
 0x365   :  { %414 = vsyncpa [#allocation7], 1 }
 0x366   :  { %416 = vsyncpa [#allocation7 + $0x1], 1 }

</bundles_post_ra>
